<compile_context>
chip_gen: v7x
topology: tpu7x:2x2x1
jax: 0.10.0
libtpu: 0.0.40
codegen_flags: <defaults>
</compile_context>

<pallas_src>
import math

import jax
import jax.numpy as jnp
from jax import lax
from jax.experimental import pallas as pl
from jax.experimental.pallas import tpu as pltpu


# ------------------------ fused kernel ------------------------
def _layer(h, wt, bias, node_axis, compute_dtype):
    """One DynamicGraphConvolution layer, S-free factorization, N-last output.

    h:    (N, F_in) if node_axis == 0 (first layer, natural input layout)
          (F_in, N) if node_axis == 1 (subsequent layers), float32
    wt:   (F_out, F_in)  -- transposed weight
    bias: (F_out, 1)
    returns (F_out, N) float32
    """
    feat_axis = 1 - node_axis
    n = h.shape[node_axis]

    hc = h.astype(compute_dtype)
    wt_c = wt.astype(compute_dtype)

    # rowsum(S)_n = x_n . sum_m x_m  -> two tiny f32 matmuls (MXU), no N^2
    # matrix and no O(N^2) XLU reduction.  Kept in f32 for normalization
    # accuracy even in bf16 mode (negligible cost).
    ones_n = jnp.ones((1, n), dtype=jnp.float32)
    colsum = lax.dot_general(                      # (1, F_in) = sum over nodes
        ones_n, h, (((1,), (node_axis,)), ((), ())),
        preferred_element_type=jnp.float32)
    rowsum = lax.dot_general(                      # (1, N)  rowsum of S
        colsum, h, (((1,), (feat_axis,)), ((), ())),
        preferred_element_type=jnp.float32)
    rowsum = rowsum + 1.0                          # "+ I" self loop
    rowsum = jnp.where(rowsum == 0.0, 1.0, rowsum)  # spec guard
    d = lax.rsqrt(rowsum)                          # (1, N), f32 EUP

    # support^T = W^T x^T + b   (MXU; bf16 operands optional, f32 accumulate)
    support_t = lax.dot_general(                   # (F_out, N)
        wt_c, hc, (((1,), (feat_axis,)), ((), ())),
        preferred_element_type=jnp.float32) + bias
    y_t = d * support_t                            # (F_out, N), f32 VPU

    # S @ y = x @ (x^T @ y):
    #   t^T = y^T x   -- contraction over N (deep MXU contraction)
    t_t = lax.dot_general(                         # (F_out, F_in)
        y_t.astype(compute_dtype), hc, (((1,), (node_axis,)), ((), ())),
        preferred_element_type=jnp.float32)
    #   z^T = t^T x^T
    z_t = lax.dot_general(                         # (F_out, N)
        t_t.astype(compute_dtype), hc, (((1,), (feat_axis,)), ((), ())),
        preferred_element_type=jnp.float32)

    out_t = d * (z_t + y_t)                        # (F_out, N), f32
    return jnp.maximum(out_t, 0.0)                 # ReLU


def _make_stacked_kernel(num_layers, batch_block, compute_dtype):
    def kernel(*refs):
        # refs = (x_ref, wt1, b1, wt2, b2, ..., o_ref)
        x_ref = refs[0]
        o_ref = refs[-1]
        p_refs = refs[1:-1]

        def run_one(b):
            # First layer consumes the natural (N, F_in) layout; every layer
            # emits an N-last (F, N) activation, so no transposes are needed.
            h = x_ref[b].astype(jnp.float32)
            node_axis = 0
            for li in range(num_layers):
                wt = p_refs[2 * li][...]               # (F_out, F_in)
                bias = p_refs[2 * li + 1][...].astype(jnp.float32)  # (F_out, 1)
                h = _layer(h, wt, bias, node_axis, compute_dtype)
                node_axis = 1
            o_ref[b] = h.astype(o_ref.dtype)           # (F_out, N), lane-dense

        # Folded batch elements: each iteration stores its result immediately,
        # so live ranges stay bounded.  (batch_block is a small static int.)
        for b in range(batch_block):
            run_one(b)

    return kernel


def stacked_dynamic_graph_conv(x, params, *, compute_dtype=jnp.float32,
                               batch_block=None):
    """StackedDynamicGraphConvolution.forward with adj=None (all layers fused).

    x:      (B, N, F_in) float32
    params: list of (w, b) with w: (F_l, F_{l+1}), b: (F_{l+1},)
    compute_dtype: matmul-operand dtype (f32 accumulate). Use jnp.bfloat16 on
                   v6e/v7x for ~3x MXU throughput; elementwise stays f32.
    returns (B, N, F_out) float32
    """
    B, N, F_in = x.shape
    num_layers = len(params)
    F_out = params[-1][0].shape[1]

    # Fold batch elements per grid step, but keep >= 2 grid steps so both v7x
    # TensorCores get work (dimension_semantics="parallel").
    if batch_block is None:
        cand = max(1, B // 2)
        batch_block = cand if B % cand == 0 else 1
    assert B % batch_block == 0, "batch_block must divide B"
    grid = (B // batch_block,)

    in_specs = [pl.BlockSpec((batch_block, N, F_in), lambda i: (i, 0, 0))]
    flat_params = []
    for (w, b) in params:
        fi, fo = w.shape
        # Weights pre-transposed to (F_out, F_in), bias as (F_out, 1) column:
        # matches the kernel's N-last activation layout with zero in-kernel
        # transposes.  Constant index_map -> DMA'd once.
        in_specs.append(pl.BlockSpec((fo, fi), lambda i: (0, 0)))
        in_specs.append(pl.BlockSpec((fo, 1), lambda i: (0, 0)))
        flat_params += [jnp.asarray(w).T, jnp.asarray(b).reshape(fo, 1)]

    # Kernel writes an N-last (B, F_out, N) slab (lane-dense stores for
    # realistic N); transpose back to the module's (B, N, F_out) outside.
    out_t = pl.pallas_call(
        _make_stacked_kernel(num_layers, batch_block, compute_dtype),
        out_shape=jax.ShapeDtypeStruct((B, F_out, N), x.dtype),
        grid_spec=pltpu.PrefetchScalarGridSpec(
            num_scalar_prefetch=0,
            grid=grid,
            in_specs=in_specs,
            out_specs=pl.BlockSpec((batch_block, F_out, N),
                                   lambda i: (i, 0, 0)),
        ),
        compiler_params=pltpu.CompilerParams(
            dimension_semantics=("parallel",)),
    )(x, *flat_params)
    return jnp.swapaxes(out_t, 1, 2)


# ------------------------ pure-JAX reference (faithful to PyTorch) ------------------------
def _ref_layer(x, w, b):
    s = jnp.einsum("bnf,bmf->bnm", x, x)
    n = x.shape[1]
    adj = s + jnp.eye(n, dtype=x.dtype)[None]
    rowsum = jnp.sum(adj, axis=-1)
    rowsum = jnp.where(rowsum == 0.0, rowsum + 1.0, rowsum)
    d_inv_sqrt = rowsum ** -0.5
    d_mat = jnp.einsum("bn,nm->bnm", d_inv_sqrt, jnp.eye(n, dtype=x.dtype))
    adj_n = jnp.einsum("bnk,bkm->bnm",
                       jnp.einsum("bnk,bkm->bnm", d_mat, adj), d_mat)
    support = jnp.einsum("bnf,fo->bno", x, w) + b
    return jax.nn.relu(jnp.einsum("bnm,bmo->bno", adj_n, support))


def _ref_forward(x, params):
    for (w, b) in params:
        x = _ref_layer(x, w, b)
    return x


# ------------------------ deterministic param init ------------------------
def xavier_uniform(key, fan_in, fan_out, gain=1.414):
    bound = gain * math.sqrt(6.0 / (fan_in + fan_out))
    return jax.random.uniform(key, (fan_in, fan_out), jnp.float32, -bound, bound)


def init_params(key, in_features, hidden_features, out_features, num_layers=3):
    dims = [in_features] + [hidden_features] * (num_layers - 1) + [out_features]
    params = []
    keys = jax.random.split(key, 2 * num_layers)
    for li in range(num_layers):
        w = xavier_uniform(keys[2 * li], dims[li], dims[li + 1])
        # module init is zeros; use small nonzero biases to exercise the bias path
        b = 0.01 * jax.random.uniform(keys[2 * li + 1], (dims[li + 1],), jnp.float32)
        params.append((w, b))
    return params


if __name__ == "__main__":
    key = jax.random.PRNGKey(0)
    k_x, k_p = jax.random.split(key)

    B, N = 2, 16            # batch, graph nodes
    in_features = 16
    hidden_features = 32
    out_features = 16

    # Positive features (like real activations): keeps rowsum > 0 so the
    # D^-1/2 normalization is well defined (the reference NaNs otherwise).
    x = jax.random.uniform(k_x, (B, N, in_features), jnp.float32,
                           minval=0.05, maxval=1.0)
    params = init_params(k_p, in_features, hidden_features, out_features,
                         num_layers=3)

    ref = jax.block_until_ready(_ref_forward(x, params))

    # f32 path (v5e-safe), tight tolerance.
    out = jax.block_until_ready(stacked_dynamic_graph_conv(x, params))
    assert out.shape == (B, N, out_features)
    assert bool(jnp.all(jnp.isfinite(out))), "non-finite output"
    assert jnp.allclose(out, ref, atol=1e-3, rtol=1e-3), "mismatch vs JAX reference"

    # bf16 MXU-operand path (v6e/v7x), f32 accumulation; looser tolerance.
    out_bf16 = jax.block_until_ready(
        stacked_dynamic_graph_conv(x, params, compute_dtype=jnp.bfloat16))
    assert bool(jnp.all(jnp.isfinite(out_bf16))), "non-finite bf16 output"
    assert jnp.allclose(out_bf16, ref, atol=1e-1, rtol=1e-1), "bf16 path mismatch"

    print("KERNEL_OK")
</pallas_src>

<mosaic_0001>
module attributes {stable_mosaic.version = 11 : i64} {
  func.func @kernel(%arg0: i32, %arg1: memref<1x16x16xf32, #tpu.memory_space<vmem>>, %arg2: memref<32x16xf32, #tpu.memory_space<vmem>>, %arg3: memref<32x1xf32, #tpu.memory_space<vmem>>, %arg4: memref<32x32xf32, #tpu.memory_space<vmem>>, %arg5: memref<32x1xf32, #tpu.memory_space<vmem>>, %arg6: memref<16x32xf32, #tpu.memory_space<vmem>>, %arg7: memref<16x1xf32, #tpu.memory_space<vmem>>, %arg8: memref<1x16x16xf32, #tpu.memory_space<vmem>>) attributes {dimension_semantics = [#tpu.dimension_semantics<parallel>], iteration_bounds = array<i64: 2>, scalar_prefetch = 0 : i64, scratch_operands = 0 : i64, tpu.core_type = #tpu.core_type<tc>, window_params = [{transform_indices = @transform_0, window_bounds = array<i64: 1, 16, 16>}, {pipeline_mode = #tpu.pipeline_mode<synchronous>, transform_indices = @transform_1, window_bounds = array<i64: 32, 16>}, {pipeline_mode = #tpu.pipeline_mode<synchronous>, transform_indices = @transform_2, window_bounds = array<i64: 32, 1>}, {pipeline_mode = #tpu.pipeline_mode<synchronous>, transform_indices = @transform_3, window_bounds = array<i64: 32, 32>}, {pipeline_mode = #tpu.pipeline_mode<synchronous>, transform_indices = @transform_4, window_bounds = array<i64: 32, 1>}, {pipeline_mode = #tpu.pipeline_mode<synchronous>, transform_indices = @transform_5, window_bounds = array<i64: 16, 32>}, {pipeline_mode = #tpu.pipeline_mode<synchronous>, transform_indices = @transform_6, window_bounds = array<i64: 16, 1>}, {transform_indices = @transform_7, window_bounds = array<i64: 1, 16, 16>}]} {
    %c0 = arith.constant 0 : index
    %c0_0 = arith.constant 0 : index
    %c0_1 = arith.constant 0 : index
    %0 = vector.load %arg1[%c0, %c0_0, %c0_1] : memref<1x16x16xf32, #tpu.memory_space<vmem>>, vector<1x16x16xf32>
    %1 = vector.shape_cast %0 : vector<1x16x16xf32> to vector<16x16xf32>
    %c0_2 = arith.constant 0 : index
    %c0_3 = arith.constant 0 : index
    %2 = vector.load %arg2[%c0_2, %c0_3] : memref<32x16xf32, #tpu.memory_space<vmem>>, vector<32x16xf32>
    %c0_4 = arith.constant 0 : index
    %c0_5 = arith.constant 0 : index
    %3 = vector.load %arg3[%c0_4, %c0_5] : memref<32x1xf32, #tpu.memory_space<vmem>>, vector<32x1xf32>
    %cst = arith.constant 1.000000e+00 : f32
    %4 = vector.broadcast %cst : f32 to vector<1x16xf32>
    %cst_6 = arith.constant dense<0.000000e+00> : vector<1x16xf32>
    %5 = tpu.matmul %4, %1, %cst_6 {dimension_numbers = #tpu.dot_dimension_numbers<[1], [0], [0], [1], [0, 0, 1, 1], [], []>} : vector<1x16xf32>, vector<16x16xf32>, vector<1x16xf32> -> vector<1x16xf32>
    %cst_7 = arith.constant dense<0.000000e+00> : vector<1x16xf32>
    %6 = tpu.matmul %5, %1, %cst_7 {dimension_numbers = #tpu.dot_dimension_numbers<[1], [1], [0], [0], [0, 0, 1, 0], [], []>} : vector<1x16xf32>, vector<16x16xf32>, vector<1x16xf32> -> vector<1x16xf32>
    %cst_8 = arith.constant 1.000000e+00 : f32
    %7 = vector.broadcast %cst_8 : f32 to vector<1x16xf32>
    %8 = arith.addf %6, %7 : vector<1x16xf32>
    %cst_9 = arith.constant 0.000000e+00 : f32
    %9 = vector.broadcast %cst_9 : f32 to vector<1x16xf32>
    %10 = arith.cmpf oeq, %8, %9 : vector<1x16xf32>
    %cst_10 = arith.constant 1.000000e+00 : f32
    %11 = vector.broadcast %cst_10 : f32 to vector<1x16xf32>
    %12 = arith.select %10, %11, %8 : vector<1x16xi1>, vector<1x16xf32>
    %13 = math.rsqrt %12 : vector<1x16xf32>
    %cst_11 = arith.constant dense<0.000000e+00> : vector<32x16xf32>
    %14 = tpu.matmul %2, %1, %cst_11 {dimension_numbers = #tpu.dot_dimension_numbers<[1], [1], [0], [0], [0, 0, 1, 0], [], []>} : vector<32x16xf32>, vector<16x16xf32>, vector<32x16xf32> -> vector<32x16xf32>
    %15 = vector.broadcast %3 : vector<32x1xf32> to vector<32x16xf32>
    %16 = arith.addf %14, %15 : vector<32x16xf32>
    %17 = vector.broadcast %13 : vector<1x16xf32> to vector<32x16xf32>
    %18 = arith.mulf %17, %16 : vector<32x16xf32>
    %cst_12 = arith.constant dense<0.000000e+00> : vector<32x16xf32>
    %19 = tpu.matmul %18, %1, %cst_12 {dimension_numbers = #tpu.dot_dimension_numbers<[1], [0], [0], [1], [0, 0, 1, 1], [], []>} : vector<32x16xf32>, vector<16x16xf32>, vector<32x16xf32> -> vector<32x16xf32>
    %cst_13 = arith.constant dense<0.000000e+00> : vector<32x16xf32>
    %20 = tpu.matmul %19, %1, %cst_13 {dimension_numbers = #tpu.dot_dimension_numbers<[1], [1], [0], [0], [0, 0, 1, 0], [], []>} : vector<32x16xf32>, vector<16x16xf32>, vector<32x16xf32> -> vector<32x16xf32>
    %21 = arith.addf %20, %18 : vector<32x16xf32>
    %22 = vector.broadcast %13 : vector<1x16xf32> to vector<32x16xf32>
    %23 = arith.mulf %22, %21 : vector<32x16xf32>
    %cst_14 = arith.constant 0.000000e+00 : f32
    %24 = vector.broadcast %cst_14 : f32 to vector<32x16xf32>
    %25 = arith.maximumf %23, %24 : vector<32x16xf32>
    %c0_15 = arith.constant 0 : index
    %c0_16 = arith.constant 0 : index
    %26 = vector.load %arg4[%c0_15, %c0_16] : memref<32x32xf32, #tpu.memory_space<vmem>>, vector<32x32xf32>
    %c0_17 = arith.constant 0 : index
    %c0_18 = arith.constant 0 : index
    %27 = vector.load %arg5[%c0_17, %c0_18] : memref<32x1xf32, #tpu.memory_space<vmem>>, vector<32x1xf32>
    %cst_19 = arith.constant 1.000000e+00 : f32
    %28 = vector.broadcast %cst_19 : f32 to vector<1x16xf32>
    %cst_20 = arith.constant dense<0.000000e+00> : vector<1x32xf32>
    %29 = tpu.matmul %28, %25, %cst_20 {dimension_numbers = #tpu.dot_dimension_numbers<[1], [1], [0], [0], [0, 0, 1, 0], [], []>} : vector<1x16xf32>, vector<32x16xf32>, vector<1x32xf32> -> vector<1x32xf32>
    %cst_21 = arith.constant dense<0.000000e+00> : vector<1x16xf32>
    %30 = tpu.matmul %29, %25, %cst_21 {dimension_numbers = #tpu.dot_dimension_numbers<[1], [0], [0], [1], [0, 0, 1, 1], [], []>} : vector<1x32xf32>, vector<32x16xf32>, vector<1x16xf32> -> vector<1x16xf32>
    %cst_22 = arith.constant 1.000000e+00 : f32
    %31 = vector.broadcast %cst_22 : f32 to vector<1x16xf32>
    %32 = arith.addf %30, %31 : vector<1x16xf32>
    %cst_23 = arith.constant 0.000000e+00 : f32
    %33 = vector.broadcast %cst_23 : f32 to vector<1x16xf32>
    %34 = arith.cmpf oeq, %32, %33 : vector<1x16xf32>
    %cst_24 = arith.constant 1.000000e+00 : f32
    %35 = vector.broadcast %cst_24 : f32 to vector<1x16xf32>
    %36 = arith.select %34, %35, %32 : vector<1x16xi1>, vector<1x16xf32>
    %37 = math.rsqrt %36 : vector<1x16xf32>
    %cst_25 = arith.constant dense<0.000000e+00> : vector<32x16xf32>
    %38 = tpu.matmul %26, %25, %cst_25 {dimension_numbers = #tpu.dot_dimension_numbers<[1], [0], [0], [1], [0, 0, 1, 1], [], []>} : vector<32x32xf32>, vector<32x16xf32>, vector<32x16xf32> -> vector<32x16xf32>
    %39 = vector.broadcast %27 : vector<32x1xf32> to vector<32x16xf32>
    %40 = arith.addf %38, %39 : vector<32x16xf32>
    %41 = vector.broadcast %37 : vector<1x16xf32> to vector<32x16xf32>
    %42 = arith.mulf %41, %40 : vector<32x16xf32>
    %cst_26 = arith.constant dense<0.000000e+00> : vector<32x32xf32>
    %43 = tpu.matmul %42, %25, %cst_26 {dimension_numbers = #tpu.dot_dimension_numbers<[1], [1], [0], [0], [0, 0, 1, 0], [], []>} : vector<32x16xf32>, vector<32x16xf32>, vector<32x32xf32> -> vector<32x32xf32>
    %cst_27 = arith.constant dense<0.000000e+00> : vector<32x16xf32>
    %44 = tpu.matmul %43, %25, %cst_27 {dimension_numbers = #tpu.dot_dimension_numbers<[1], [0], [0], [1], [0, 0, 1, 1], [], []>} : vector<32x32xf32>, vector<32x16xf32>, vector<32x16xf32> -> vector<32x16xf32>
    %45 = arith.addf %44, %42 : vector<32x16xf32>
    %46 = vector.broadcast %37 : vector<1x16xf32> to vector<32x16xf32>
    %47 = arith.mulf %46, %45 : vector<32x16xf32>
    %cst_28 = arith.constant 0.000000e+00 : f32
    %48 = vector.broadcast %cst_28 : f32 to vector<32x16xf32>
    %49 = arith.maximumf %47, %48 : vector<32x16xf32>
    %c0_29 = arith.constant 0 : index
    %c0_30 = arith.constant 0 : index
    %50 = vector.load %arg6[%c0_29, %c0_30] : memref<16x32xf32, #tpu.memory_space<vmem>>, vector<16x32xf32>
    %c0_31 = arith.constant 0 : index
    %c0_32 = arith.constant 0 : index
    %51 = vector.load %arg7[%c0_31, %c0_32] : memref<16x1xf32, #tpu.memory_space<vmem>>, vector<16x1xf32>
    %cst_33 = arith.constant 1.000000e+00 : f32
    %52 = vector.broadcast %cst_33 : f32 to vector<1x16xf32>
    %cst_34 = arith.constant dense<0.000000e+00> : vector<1x32xf32>
    %53 = tpu.matmul %52, %49, %cst_34 {dimension_numbers = #tpu.dot_dimension_numbers<[1], [1], [0], [0], [0, 0, 1, 0], [], []>} : vector<1x16xf32>, vector<32x16xf32>, vector<1x32xf32> -> vector<1x32xf32>
    %cst_35 = arith.constant dense<0.000000e+00> : vector<1x16xf32>
    %54 = tpu.matmul %53, %49, %cst_35 {dimension_numbers = #tpu.dot_dimension_numbers<[1], [0], [0], [1], [0, 0, 1, 1], [], []>} : vector<1x32xf32>, vector<32x16xf32>, vector<1x16xf32> -> vector<1x16xf32>
    %cst_36 = arith.constant 1.000000e+00 : f32
    %55 = vector.broadcast %cst_36 : f32 to vector<1x16xf32>
    %56 = arith.addf %54, %55 : vector<1x16xf32>
    %cst_37 = arith.constant 0.000000e+00 : f32
    %57 = vector.broadcast %cst_37 : f32 to vector<1x16xf32>
    %58 = arith.cmpf oeq, %56, %57 : vector<1x16xf32>
    %cst_38 = arith.constant 1.000000e+00 : f32
    %59 = vector.broadcast %cst_38 : f32 to vector<1x16xf32>
    %60 = arith.select %58, %59, %56 : vector<1x16xi1>, vector<1x16xf32>
    %61 = math.rsqrt %60 : vector<1x16xf32>
    %cst_39 = arith.constant dense<0.000000e+00> : vector<16x16xf32>
    %62 = tpu.matmul %50, %49, %cst_39 {dimension_numbers = #tpu.dot_dimension_numbers<[1], [0], [0], [1], [0, 0, 1, 1], [], []>} : vector<16x32xf32>, vector<32x16xf32>, vector<16x16xf32> -> vector<16x16xf32>
    %63 = vector.broadcast %51 : vector<16x1xf32> to vector<16x16xf32>
    %64 = arith.addf %62, %63 : vector<16x16xf32>
    %65 = vector.broadcast %61 : vector<1x16xf32> to vector<16x16xf32>
    %66 = arith.mulf %65, %64 : vector<16x16xf32>
    %cst_40 = arith.constant dense<0.000000e+00> : vector<16x32xf32>
    %67 = tpu.matmul %66, %49, %cst_40 {dimension_numbers = #tpu.dot_dimension_numbers<[1], [1], [0], [0], [0, 0, 1, 0], [], []>} : vector<16x16xf32>, vector<32x16xf32>, vector<16x32xf32> -> vector<16x32xf32>
    %cst_41 = arith.constant dense<0.000000e+00> : vector<16x16xf32>
    %68 = tpu.matmul %67, %49, %cst_41 {dimension_numbers = #tpu.dot_dimension_numbers<[1], [0], [0], [1], [0, 0, 1, 1], [], []>} : vector<16x32xf32>, vector<32x16xf32>, vector<16x16xf32> -> vector<16x16xf32>
    %69 = arith.addf %68, %66 : vector<16x16xf32>
    %70 = vector.broadcast %61 : vector<1x16xf32> to vector<16x16xf32>
    %71 = arith.mulf %70, %69 : vector<16x16xf32>
    %cst_42 = arith.constant 0.000000e+00 : f32
    %72 = vector.broadcast %cst_42 : f32 to vector<16x16xf32>
    %73 = arith.maximumf %71, %72 : vector<16x16xf32>
    %c0_43 = arith.constant 0 : index
    %c0_44 = arith.constant 0 : index
    %c0_45 = arith.constant 0 : index
    %74 = vector.load %arg8[%c0_43, %c0_44, %c0_45] : memref<1x16x16xf32, #tpu.memory_space<vmem>>, vector<1x16x16xf32>
    %75 = vector.shape_cast %74 : vector<1x16x16xf32> to vector<16x16xf32>
    %76 = vector.shape_cast %73 : vector<16x16xf32> to vector<1x16x16xf32>
    tpu.vector_store %arg8[%c0_43, %c0_44, %c0_45], %76 {strides = array<i32>} : memref<1x16x16xf32, #tpu.memory_space<vmem>>, vector<1x16x16xf32>,
    return
  }
  func.func @transform_0(%arg0: i32) -> (i32, i32, i32) {
    %c0_i32 = arith.constant 0 : i32
    %c0_i32_0 = arith.constant 0 : i32
    %c0_i32_1 = arith.constant 0 : i32
    return %arg0, %c0_i32, %c0_i32_0 : i32, i32, i32
  }
  func.func @transform_1(%arg0: i32) -> (i32, i32) {
    %c0_i32 = arith.constant 0 : i32
    %c0_i32_0 = arith.constant 0 : i32
    %c0_i32_1 = arith.constant 0 : i32
    return %c0_i32, %c0_i32_0 : i32, i32
  }
  func.func @transform_2(%arg0: i32) -> (i32, i32) {
    %c0_i32 = arith.constant 0 : i32
    %c0_i32_0 = arith.constant 0 : i32
    %c0_i32_1 = arith.constant 0 : i32
    return %c0_i32, %c0_i32_0 : i32, i32
  }
  func.func @transform_3(%arg0: i32) -> (i32, i32) {
    %c0_i32 = arith.constant 0 : i32
    %c0_i32_0 = arith.constant 0 : i32
    %c0_i32_1 = arith.constant 0 : i32
    return %c0_i32, %c0_i32_0 : i32, i32
  }
  func.func @transform_4(%arg0: i32) -> (i32, i32) {
    %c0_i32 = arith.constant 0 : i32
    %c0_i32_0 = arith.constant 0 : i32
    %c0_i32_1 = arith.constant 0 : i32
    return %c0_i32, %c0_i32_0 : i32, i32
  }
  func.func @transform_5(%arg0: i32) -> (i32, i32) {
    %c0_i32 = arith.constant 0 : i32
    %c0_i32_0 = arith.constant 0 : i32
    %c0_i32_1 = arith.constant 0 : i32
    return %c0_i32, %c0_i32_0 : i32, i32
  }
  func.func @transform_6(%arg0: i32) -> (i32, i32) {
    %c0_i32 = arith.constant 0 : i32
    %c0_i32_0 = arith.constant 0 : i32
    %c0_i32_1 = arith.constant 0 : i32
    return %c0_i32, %c0_i32_0 : i32, i32
  }
  func.func @transform_7(%arg0: i32) -> (i32, i32, i32) {
    %c0_i32 = arith.constant 0 : i32
    %c0_i32_0 = arith.constant 0 : i32
    %c0_i32_1 = arith.constant 0 : i32
    return %arg0, %c0_i32, %c0_i32_0 : i32, i32, i32
  }
}

</mosaic_0001>

<bundles_post_ra>
// kernel: tpu_custom_call.1
= control target key start
LH: loop header
LB: loop body
LE: loop exit
PB: predicated region body
PF: predicated region fallthrough
CT: control target
= control target key end

     0   :  { %12 = vsyncpa [#allocation3], 0  ;;  %s2632_s0 = inlined_call_operand.vmem [shape: f32[2,16,16], index: 0, kind: input, shape index: {}]   ;;  %s2633_s1 = inlined_call_operand.vmem [shape: f32[32,16], index: 1, kind: input, shape index: {}]   ;;  %s2634_s2 = inlined_call_operand.vmem [shape: f32[32,1], index: 2, kind: input, shape index: {}]   ;;  %s2635_s3 = inlined_call_operand.vmem [shape: f32[32,32], index: 3, kind: input, shape index: {}]   ;;  %s2636_s4 = inlined_call_operand.vmem [shape: f32[32,1], index: 4, kind: input, shape index: {}]   ;;  %s2637_s5 = inlined_call_operand.vmem [shape: f32[16,32], index: 5, kind: input, shape index: {}]   ;;  %s2638_s6 = inlined_call_operand.vmem [shape: f32[16,1], index: 6, kind: input, shape index: {}]   ;;  %s2639_s7 = inlined_call_operand.hbm [shape: f32[2,16,16], index: 7, kind: output, shape index: {}]  }
   0x1   :  { %14 = vsyncpa [#allocation3 + $0x1], 0  ;;  %s2361_s24 = smov 0   ;;  %s2363_s25 = smov 0  }
   0x2   :  { %s2365_s26 = smov 0   ;;  %s2367_s27 = smov 0  }
   0x3 LB: > { %s2382_s28 = sadd.s32 4294967295, %s2311_s27   ;;  %s1767_s29 = sadd.s32 4294967294, %s2311_s27   ;;  %s2311_s27 = sphi %s2367_s27, %s2647_s27   ;;  %s2307_s26 = sphi %s2365_s26, %s2646_s26   ;;  %s2303_s25 = sphi %s2363_s25, %s2645_s25   ;;  %s2299_s24 = sphi %s2361_s24, %s2644_s24  }
   0x4   : > { %s2386_s30 = sadd.s32 1, %s2311_s27   ;;  %s179_s8 = sadd.s32 1, %s2307_s26 }
   0x5   : > { %s176_s9 = ssub.s32 %s2311_s27, %s2386_s30  ;;  %p189_p0 = scmp.ne.s32.totalorder %s2307_s26, %s2303_s25 }
   0x6   : > { %p177_p1 = scmp.eq.s32.totalorder %s176_s9, 0  ;;  %p190_p2 = scmp.eq.s32.totalorder %s2382_s28, 1 }
   0x7   : > { %p195_p3 = scmp.ne.s32.totalorder %s2303_s25, %s2299_s24  ;;  %p196_p4 = scmp.eq.s32.totalorder %s1767_s29, 1 }
   0x8   : > { %s2397_s10 = scalar_select %p177_p1, %s2307_s26, %s179_s8  }
   0x9   : > { %p2399_p5 = por %p190_p2, %p189_p0  ;;  %p2403_p6 = por %p196_p4, %p195_p3 }
   0xa   : > { %p1770_p7 = scmp.ge.s32.totalorder %s2311_s27, 1  ;;  %p240_p8 = scmp.lt.s32.totalorder %s2311_s27, 3 }
   0xc   : > { %p241_p9 = pnand %p1770_p7, %p240_p8 }
   0xd   : > { %p272_p10 = scmp.lt.s32.totalorder (!%p241_p9), %s2382_s28, 1  ;;  %v2313_v0 = vmov (!%p241_p9), 0.0|0.0   ;;  %vm2314_vm0 = vmmov (!%p241_p9), 0   ;;  %v2315_v1 = vmov (!%p241_p9), 0.0   ;;  %vm287_vm1 = vcmask (!%p241_p9), 130048   ;;  %v279_v7 = vld [vmem:[%s2633_s1] sm:$0xff] (!%p241_p9) }
   0xe   : > { %244 = sbr.rel (%p241_p9) target bundleno = 2711 (0xa97), region = 48  ;;  %2088 = vmatprep.subr.bf16.mxu1 (!%p241_p9), %v2313_v0  ;;  %1929 = vmatprep.mubr.msk.f32.mxu1 (!%p241_p9), %vm2314_vm0, %v2315_v1  ;;  %vm2419_vm2 = vmpackc.low (!%p241_p9), %vm287_vm1, %vm287_vm1  ;;  %v2316_v6 = vmov (!%p241_p9), 1.0   ;;  %v280_v8 = vld [vmem:[%s2633_s1 + $0x8] sm:$0xff] (!%p241_p9)  ;;  %v281_v9 = vld [vmem:[%s2633_s1 + $0x10] sm:$0xff] (!%p241_p9)  ;;  %v2317_v10 = vmov (!%p241_p9), 0   ;;  %v560_v32 = vlaneseq (!%p241_p9)  ;;  %vm860_vm4 = vcmask (!%p241_p9), 261120  }
   0xf   : > { %1943 = vmatprep.mubr.msk.f32.mxu0 (!%p241_p9), %vm287_vm1, %v279_v7  ;;  %2241 = vset.pattern.permute.xlu0 (!%p241_p9), %v2317_v10  ;;  %v283_v11 = vld [vmem:[%s2634_s2] sm:$0xff] (!%p241_p9)  ;;  %v285_v12 = vld [vmem:[%s2634_s2 + $0x10] sm:$0xff] (!%p241_p9)  ;;  %v282_v13 = vld [vmem:[%s2633_s1 + $0x18] sm:$0xff] (!%p241_p9)  ;;  %s269_s16 = sand.u32 (!%p241_p9), 1, %s2303_s25   ;;  %s1838_s18 = sshll.u32 (!%p241_p9), %s2382_s28, 8 }
  0x10   : > { %445 = vperm.xlu0 (!%p241_p9), %2241, %v283_v11   ;;  %v284_v14 = vld [vmem:[%s2634_s2 + $0x8] sm:$0xff] (!%p241_p9)  ;;  %2242 = vset.pattern.permute.xlu1 (!%p241_p9), %v2317_v10  ;;  %v286_v15 = vld [vmem:[%s2634_s2 + $0x18] sm:$0xff] (!%p241_p9)  ;;  %v774_v16 = vld [vmem:[%s2636_s4] sm:$0xff] (!%p241_p9)  ;;  %v561_v33 = vshrl.u32 (!%p241_p9), %v560_v32, 7  ;;  %s2585_s23 = scalar_lea.hbm (!%p241_p9), %s2639_s7, %s1838_s18  ;;  %s2318_s8 = smov (!%p241_p9), [#allocation2]  }
  0x11   : > { %455 = vperm.xlu1 (!%p241_p9), %2242, %v285_v12   ;;  %v775_v17 = vld [vmem:[%s2636_s4 + $0x8] sm:$0xff] (!%p241_p9)  ;;  %v776_v18 = vld [vmem:[%s2636_s4 + $0x10] sm:$0xff] (!%p241_p9)  ;;  %v777_v19 = vld [vmem:[%s2636_s4 + $0x18] sm:$0xff] (!%p241_p9)  ;;  %s2253_s9 = sshll.u32 (!%p241_p9), %s2318_s8, 4  ;;  %s2254_s9 = int_to_ptr.vmem [resolvable:$false] %s2253_s9 }
  0x12   : > { %v1266_v20 = vld [vmem:[%s2638_s6] sm:$0xff] (!%p241_p9)  ;;  %v1267_v21 = vld [vmem:[%s2638_s6 + $0x8] sm:$0xff] (!%p241_p9)  ;;  %v2487_v35 = vsub.s32 (!%p241_p9), 0, %v561_v33 }
  0x13   : > { %v770_v11 = vld [vmem:[%s2635_s3] sm:$0xff] (!%p241_p9) }
  0x14   : > { %450 = vperm.xlu0 (!%p241_p9), %2241, %v284_v14   ;;  %v771_v14 = vld [vmem:[%s2635_s3 + $0x8] sm:$0xff] (!%p241_p9) }
  0x15   : > { %s273_s13 = scalar_select %p272_p10, %s2382_s28, 1  ;;  %460 = vperm.xlu1 %2242, %v286_v15   ;;  %v772_v15 = vld [vmem:[%s2635_s3 + $0x10] sm:$0xff] }
  0x16   : > { %s2591_s28 = scalar_lea.sflag [#allocation3], %s269_s16 }
  0x17   : > { %s1837_s14 = sshll.u32 %s273_s13, 4  ;;  %s2255_s13 = scalar_lea.vmem %s2254_s9, 512 }
  0x18   : > { %s276_s17 = scalar_lea.vmem %s2632_s0, %s1837_s14  ;;  %939 = vperm.xlu0 %2241, %v774_v16   ;;  %v773_v16 = vld [vmem:[%s2635_s3 + $0x18] sm:$0xff] }
  0x19   : > { %v277_v2 = vld [vmem:[%s276_s17] sm:$0xff]  ;;  %v278_v3 = vld [vmem:[%s276_s17 + $0x8] sm:$0xff]  ;;  %944 = vperm.xlu1 %2242, %v775_v17   ;;  %s1771_s17 = sshll.u32 %s269_s16, 4 }
  0x1a   : > { %v2089_v4 = vpack.c.bf16 %v278_v3, %v277_v2  ;;  %s271_s19 = scalar_lea.vmem [#allocation2], %s1771_s17 }
  0x1b   : > { %s1705_s20 = sshll.u32 %s271_s19, 4  ;;  %s2587_s20 = int_to_ptr.vmem [resolvable:$true] %s1705_s20 }
  0x1c   : > { %2090 = vmatpush3.bf16.msra.mxu1 %v2089_v4  ;;  %2097 = vmatprep.subr.msk.bf16.mxu0 %vm2419_vm2, %v2089_v4  ;;  %s2249_s29 = scalar_lea.vmem %s2587_s20, 256  ;;  %p2256_p0 = scmp.lt.s32.totalorder %s2587_s20, %s2254_s9 }
  0x1d   : > { %2091 = vmatprep.subr.bf16.mxu1 %v2313_v0  ;;  %2100 = vmatpush3.bf16.xpose.msk.msra.mxu0 %vm2419_vm2, %v2089_v4  ;;  %p2250_p11 = scmp.ne.s32.totalorder %s2587_s20, %s2249_s29  ;;  %p2257_p1 = scmp.lt.s32.totalorder %s2255_s13, %s2249_s29 }
  0x1e   : > { %2107 = vmatprep.subr.msk.bf16.mxu0 %vm2419_vm2, %v2089_v4  ;;  %949 = vperm.xlu0 %2241, %v776_v18  }
  0x1f   : > { %1930 = vmatmul.mubr.msk.f32.vlgmr.msra.gmra.mrb[0].mxu1 %vm287_vm1, %v2316_v6  ;;  %954 = vperm.xlu1 %2242, %v777_v19   ;;  %p2251_p12 = pnand %p2250_p11, %p2399_p5  ;;  %p2258_p2 = por %p2257_p1, %p2256_p0 }
  0x20   : > { %1936 = vmatprep.mubr.msk.f32.mxu1 %vm2314_vm0, %v2315_v1 }
  0x21   : > { %p2252_p13 = pneg %p2251_p12 }
  0x22   : > { %1428 = vperm.xlu0 %2241, %v1266_v20  }
  0x23   : > { %1433 = vperm.xlu1 %2242, %v1267_v21   ;;  %p2259_p3 = pnand %p2258_p2, %p2252_p13 }
  0x24   : > { %1944 = vmatmul.mubr.msk.f32.vlgmr.msra.gmra.mrb[0].mxu0 %vm287_vm1, %v280_v8 }
  0x25   : > { %2094 = vmatpush3.bf16.xpose.msk.msra.mxu1 %vm2419_vm2, %v2089_v4  ;;  %1946 = vmatprep.mubr.msk.f32.mxu0 %vm287_vm1, %v281_v9 }
  0x26   : > { %2102 = vmatprep.subr.bf16.mxu1 %v2089_v4  ;;  %2110 = vmatpush3.bf16.xpose.msk.msra.mxu0 %vm2419_vm2, %v2089_v4 }
  0x27   : > { %2119 = vmatprep.subr.bf16.mxu0 %v2313_v0 }
  0x28   : > { %1947 = vmatmul.mubr.msk.f32.gmra.mrb[2].mxu0 %vm287_vm1, %v282_v13 }
  0x8f   : > { %v446_v34 = vpop.permute.xlu0 %445 }
  0x90   : > { %v456_v36 = vpop.permute.xlu1 %455 }
  0x93   : > { %v451_v38 = vpop.permute.xlu0 %450 }
  0x94   : > { %v461_v43 = vpop.permute.xlu1 %460 }
  0xf2   : > { %v357_v22 = vpop.f32.mrb[0].mxu1 }
  0xf3   : > { %v1931_v23 = vpop.f32.mrb[1].mxu1  ;;  %1937 = vmatmul.mubr.msk.f32.vlgmr.msra.gmra.mrb[2].mxu1 %vm287_vm1, %v357_v22 }
  0xf4   : > { %2104 = vmatpush3.bf16.msra.mxu1 %v2089_v4  ;;  %v940_v23 = vpop.permute.xlu0 %939 }
  0xf5   : > { %2111 = vmatprep.subr.bf16.mxu1 %v2313_v0 }
  0xf7   : > { %v1945_v24 = vpop.f32.mrb[0].mxu0 }
  0xf8   : > { %v541_v25 = vpop.f32.mrb[1].mxu0  ;;  %v547_v40 = vadd.f32 %v1945_v24, %v451_v38 }
  0xf9   : > { %v542_v41 = vadd.f32 %v541_v25, %v446_v34 }
  0xfb   : > { %v1948_v26 = vpop.f32.mrb[2].mxu0 }
  0xfc   : > { %v551_v27 = vpop.f32.mrb[3].mxu0  ;;  %v557_v46 = vadd.f32 %v1948_v26, %v461_v43  ;;  %v945_v26 = vpop.permute.xlu1 %944 }
  0xfd   : > { %v552_v42 = vadd.f32 %v551_v27, %v456_v36 }
 0x100   : > { %v955_v36 = vpop.permute.xlu1 %954 }
 0x1c6   : > { %v436_v28 = vpop.f32.mrb[2].mxu1 }
 0x1c7   : > { %v437_v29 = vadd.f32 1.0, %v436_v28  ;;  %v1938_v30 = vpop.f32.mrb[3].mxu1 }
 0x1c9   : > { %vm440_vm3 = vcmp.eq.f32.partialorder %v437_v29, 0.0 }
 0x1ca   : > { %v441_v31 = vsel %vm440_vm3, 1.0, %v437_v29 }
 0x1cb   : > { %2243 = vrsqrt.f32 %v441_v31  ;;  %v950_v31 = vpop.permute.xlu0 %949 }
 0x1d5   : > { %v2244_v37 = vpop.eup %2243 }
 0x1d6   : > { %v563_v39 = vrot.slane %v2244_v37, %v2487_v35 }
 0x1d8   : > { %v565_v44 = vmul.f32 %v563_v39, %v547_v40  ;;  %v564_v45 = vmul.f32 %v563_v39, %v542_v41  ;;  %v566_v47 = vmul.f32 %v563_v39, %v552_v42  ;;  %v567_v48 = vmul.f32 %v563_v39, %v557_v46 }
 0x1da   : > { %1953 = vmatprep.mubr.msk.f32.mxu1 %vm287_vm1, %v564_v45 }
 0x1db   : > { %1954 = vmatmul.mubr.msk.f32.vlgmr.msra.gmra.mrb[4].mxu1 %vm287_vm1, %v565_v44 }
 0x1dc   : > { %1956 = vmatprep.mubr.msk.f32.mxu1 %vm287_vm1, %v566_v47 }
 0x1df   : > { %1957 = vmatmul.mubr.msk.f32.gmra.mrb[6].mxu1 %vm287_vm1, %v567_v48 }
 0x1e0   : > { %1977 = vmatprep.mubr.msk.f32.mxu1 %vm2314_vm0, %v2315_v1 }
 0x2ae   : > { %v1955_v49 = vpop.f32.mrb[4].mxu1 }
 0x2af   : > { %v646_v50 = vpop.f32.mrb[5].mxu1 }
 0x2b0   : > { %1963 = vmatprep.mubr.msk.f32.mxu0 %vm287_vm1, %v646_v50 }
 0x2b1   : > { %1964 = vmatmul.mubr.msk.f32.vlgmr.msra.gmra.mrb[4].mxu0 %vm287_vm1, %v1955_v49 }
 0x2b2   : > { %v1958_v51 = vpop.f32.mrb[6].mxu1 }
 0x2b3   : > { %v656_v52 = vpop.f32.mrb[7].mxu1 }
 0x2b4   : > { %1966 = vmatprep.mubr.msk.f32.mxu0 %vm287_vm1, %v656_v52 }
 0x2b5   : > { %1967 = vmatmul.mubr.msk.f32.gmra.mrb[6].mxu0 %vm287_vm1, %v1958_v51 }
 0x2b6   : > { %1988 = vmatprep.mubr.msk.f32.mxu0 %vm2314_vm0, %v2315_v1 }
 0x384   : > { %v1965_v53 = vpop.f32.mrb[4].mxu0 }
 0x385   : > { %v749_v54 = vadd.f32 %v1965_v53, %v565_v44  ;;  %v743_v55 = vpop.f32.mrb[5].mxu0 }
 0x386   : > { %v744_v56 = vadd.f32 %v743_v55, %v564_v45 }
 0x387   : > { %v763_v57 = vmul.f32 %v749_v54, %v563_v39 }
 0x388   : > { %v762_v58 = vmul.f32 %v744_v56, %v563_v39  ;;  %v1968_v59 = vpop.f32.mrb[6].mxu0 }
 0x389   : > { %v767_v60 = vmax.f32 %v763_v57, 0.0  ;;  %v759_v61 = vadd.f32 %v1968_v59, %v567_v48  ;;  %v753_v62 = vpop.f32.mrb[7].mxu0 }
 0x38a   : > { %v766_v63 = vmax.f32 %v762_v58, 0.0  ;;  %v754_v2 = vadd.f32 %v753_v62, %v566_v47 }
 0x38b   : > { %v765_v3 = vmul.f32 %v759_v61, %v563_v39 }
 0x38c   : > { %v2112_v4 = vpack.c.bf16 %v767_v60, %v766_v63  ;;  %v764_v7 = vmul.f32 %v754_v2, %v563_v39 }
 0x38d   : > { %v769_v8 = vmax.f32 %v765_v3, 0.0 }
 0x38e   : > { %v768_v9 = vmax.f32 %v764_v7, 0.0  ;;  %2114 = vmatpush3.bf16.xpose.msk.msra.mxu1 %vm2419_vm2, %v2112_v4  ;;  %2121 = vmatpush3.bf16.msra.mxu0 %v2112_v4 }
 0x38f   : > { %2122 = vmatprep.subr.bf16.mxu0 %v2313_v0  ;;  %2115 = vmatprep.subr.bf16.mxu1 %v2313_v0 }
 0x390   : > { %v2116_v10 = vpack.c.bf16 %v769_v8, %v768_v9  ;;  %v1429_v9 = vpop.permute.xlu0 %1428 }
 0x392   : > { %2124 = vmatpush3.bf16.msra.mxu0 %v2116_v10 }
 0x393   : > { %2126 = vmatprep.subr.bf16.mxu0 %v2112_v4 }
 0x396   : > { %2118 = vmatpush3.bf16.xpose.msk.msra.mxu1 %vm2419_vm2, %v2116_v10 }
 0x397   : > { %2135 = vmatprep.subr.msk.bf16.mxu1 %vm2419_vm2, %v2112_v4 }
 0x39d   : > { %1978 = vmatmul.mubr.msk.f32.vlgmr.msra.gmra.mrb[8].mxu1 %vm287_vm1, %v2316_v6 }
 0x39e   : > { %2138 = vmatpush3.bf16.xpose.msk.msra.mxu1 %vm2419_vm2, %v2112_v4 }
 0x39f   : > { %2141 = vmatprep.subr.msk.bf16.mxu1 %vm2419_vm2, %v2116_v10 }
 0x3a6   : > { %2144 = vmatpush3.bf16.xpose.msk.msra.mxu1 %vm2419_vm2, %v2116_v10 }
 0x3a7   : > { %2161 = vmatprep.subr.bf16.mxu1 %v2313_v0 }
 0x470   : > { %v856_v12 = vpop.f32.mrb[8].mxu1 }
 0x471   : > { %v1979_v13 = vpop.f32.mrb[9].mxu1  ;;  %1989 = vmatmul.mubr.msk.f32.vlgmr.msra.gmra.mrb[8].mxu0 %vm860_vm4, %v856_v12 }
 0x472   : > { %2128 = vmatpush3.bf16.msra.mxu0 %v2112_v4  ;;  %1999 = vmatprep.mubr.msk.f32.mxu0 %vm860_vm4, %v770_v11 }
 0x473   : > { %2130 = vmatprep.subr.bf16.mxu0 %v2116_v10 }
 0x476   : > { %2132 = vmatpush3.bf16.msra.mxu0 %v2116_v10 }
 0x477   : > { %2146 = vmatprep.subr.bf16.mxu0 %v2112_v4 }
 0x479   : > { %2000 = vmatmul.mubr.msk.f32.vlgmr.msra.gmra.mrb[10].mxu0 %vm860_vm4, %v771_v14 }
 0x47a   : > { %2148 = vmatpush3.bf16.msra.mxu0 %v2112_v4  ;;  %2002 = vmatprep.mubr.msk.f32.mxu0 %vm860_vm4, %v772_v15 }
 0x47b   : > { %2150 = vmatprep.subr.bf16.mxu0 %v2116_v10 }
 0x47d   : > { %2003 = vmatmul.mubr.msk.f32.gmra.mrb[12].mxu0 %vm860_vm4, %v773_v16 }
 0x47e   : > { %2152 = vmatpush3.bf16.msra.mxu0 %v2116_v10  ;;  %v1434_v10 = vpop.permute.xlu1 %1433 }
 0x47f   : > { %2153 = vmatprep.subr.bf16.mxu0 %v2313_v0 }
 0x544   : > { %v930_v17 = vpop.f32.mrb[8].mxu0 }
 0x545   : > { %v931_v18 = vadd.f32 1.0, %v930_v17  ;;  %v1990_v19 = vpop.f32.mrb[9].mxu0 }
 0x547   : > { %vm934_vm5 = vcmp.eq.f32.partialorder %v931_v18, 0.0 }
 0x548   : > { %v935_v20 = vsel %vm934_vm5, 1.0, %v931_v18 }
 0x549   : > { %2245 = vrsqrt.f32 %v935_v20 }
 0x54c   : > { %v2001_v21 = vpop.f32.mrb[10].mxu0 }
 0x54d   : > { %v1035_v22 = vpop.f32.mrb[11].mxu0  ;;  %v1041_v29 = vadd.f32 %v2001_v21, %v945_v26 }
 0x54e   : > { %v1036_v30 = vadd.f32 %v1035_v22, %v940_v23 }
 0x550   : > { %v2004_v24 = vpop.f32.mrb[12].mxu0 }
 0x551   : > { %v1045_v25 = vpop.f32.mrb[13].mxu0  ;;  %v1051_v38 = vadd.f32 %v2004_v24, %v955_v36 }
 0x552   : > { %v1046_v34 = vadd.f32 %v1045_v25, %v950_v31 }
 0x553   : > { %v2246_v27 = vpop.eup %2245 }
 0x554   : > { %v1057_v28 = vrot.slane %v2246_v27, %v2487_v35 }
 0x556   : > { %v1059_v32 = vmul.f32 %v1057_v28, %v1041_v29  ;;  %v1058_v33 = vmul.f32 %v1057_v28, %v1036_v30  ;;  %v1060_v37 = vmul.f32 %v1057_v28, %v1046_v34  ;;  %v1061_v39 = vmul.f32 %v1057_v28, %v1051_v38 }
 0x558   : > { %2013 = vmatprep.mubr.msk.f32.mxu1 %vm287_vm1, %v1058_v33 }
 0x559   : > { %2014 = vmatmul.mubr.msk.f32.vlgmr.msra.gmra.mrb[10].mxu1 %vm287_vm1, %v1059_v32 }
 0x55a   : > { %2016 = vmatprep.mubr.msk.f32.mxu1 %vm287_vm1, %v1060_v37 }
 0x55d   : > { %2017 = vmatmul.mubr.msk.f32.gmra.mrb[12].mxu1 %vm287_vm1, %v1061_v39 }
 0x55e   : > { %2052 = vmatprep.mubr.msk.f32.mxu1 %vm2314_vm0, %v2315_v1 }
 0x62c   : > { %v2015_v40 = vpop.f32.mrb[10].mxu1 }
 0x62d   : > { %v1140_v41 = vpop.f32.mrb[11].mxu1 }
 0x62e   : > { %2027 = vmatprep.mubr.msk.f32.mxu0 %vm860_vm4, %v1140_v41 }
 0x62f   : > { %2028 = vmatmul.mubr.msk.f32.vlgmr.msra.gmra.mrb[14].mxu0 %vm860_vm4, %v2015_v40 }
 0x630   : > { %v2018_v42 = vpop.f32.mrb[12].mxu1 }
 0x631   : > { %v1150_v43 = vpop.f32.mrb[13].mxu1 }
 0x632   : > { %2030 = vmatprep.mubr.msk.f32.mxu0 %vm860_vm4, %v1150_v43 }
 0x633   : > { %2031 = vmatmul.mubr.msk.f32.gmra.mrb[16].mxu0 %vm860_vm4, %v2018_v42 }
 0x634   : > { %2041 = vmatprep.mubr.msk.f32.mxu0 %vm2314_vm0, %v2315_v1 }
 0x702   : > { %v2029_v44 = vpop.f32.mrb[14].mxu0 }
 0x703   : > { %v1243_v45 = vadd.f32 %v2029_v44, %v1059_v32  ;;  %v1237_v46 = vpop.f32.mrb[15].mxu0 }
 0x704   : > { %v1238_v47 = vadd.f32 %v1237_v46, %v1058_v33 }
 0x705   : > { %v1257_v48 = vmul.f32 %v1243_v45, %v1057_v28 }
 0x706   : > { %v1256_v49 = vmul.f32 %v1238_v47, %v1057_v28  ;;  %v2032_v50 = vpop.f32.mrb[16].mxu0 }
 0x707   : > { %v1261_v51 = vmax.f32 %v1257_v48, 0.0  ;;  %v1253_v52 = vadd.f32 %v2032_v50, %v1061_v39  ;;  %v1247_v53 = vpop.f32.mrb[17].mxu0 }
 0x708   : > { %v1260_v54 = vmax.f32 %v1256_v49, 0.0  ;;  %v1248_v55 = vadd.f32 %v1247_v53, %v1060_v37 }
 0x709   : > { %v1259_v56 = vmul.f32 %v1253_v52, %v1057_v28 }
 0x70a   : > { %v2154_v57 = vpack.c.bf16 %v1261_v51, %v1260_v54  ;;  %v1258_v58 = vmul.f32 %v1248_v55, %v1057_v28 }
 0x70b   : > { %v1263_v59 = vmax.f32 %v1259_v56, 0.0 }
 0x70c   : > { %v1262_v60 = vmax.f32 %v1258_v58, 0.0  ;;  %2156 = vmatpush3.bf16.xpose.msk.msra.mxu0 %vm2419_vm2, %v2154_v57  ;;  %2163 = vmatpush3.bf16.msra.mxu1 %v2154_v57 }
 0x70d   : > { %2164 = vmatprep.subr.bf16.mxu1 %v2313_v0  ;;  %2157 = vmatprep.subr.bf16.mxu0 %v2313_v0  ;;  %v1264_v0 = vld [vmem:[%s2637_s5] sm:$0xff] }
 0x70e   : > { %v2158_v1 = vpack.c.bf16 %v1263_v59, %v1262_v60 }
 0x710   : > { %2166 = vmatpush3.bf16.msra.mxu1 %v2158_v1 }
 0x711   : > { %2168 = vmatprep.subr.bf16.mxu1 %v2154_v57 }
 0x714   : > { %2160 = vmatpush3.bf16.xpose.msk.msra.mxu0 %vm2419_vm2, %v2158_v1 }
 0x715   : > { %2177 = vmatprep.subr.msk.bf16.mxu0 %vm2419_vm2, %v2154_v57 }
 0x71b   : > { %2042 = vmatmul.mubr.msk.f32.vlgmr.msra.gmra.mrb[18].mxu0 %vm287_vm1, %v2316_v6  ;;  %v1265_v6 = vld [vmem:[%s2637_s5 + $0x8] sm:$0xff] }
 0x71c   : > { %2180 = vmatpush3.bf16.xpose.msk.msra.mxu0 %vm2419_vm2, %v2154_v57 }
 0x71d   : > { %2183 = vmatprep.subr.msk.bf16.mxu0 %vm2419_vm2, %v2158_v1 }
 0x724   : > { %2186 = vmatpush3.bf16.xpose.msk.msra.mxu0 %vm2419_vm2, %v2158_v1 }
 0x7ee   : > { %v1346_v61 = vpop.f32.mrb[18].mxu0 }
 0x7ef   : > { %v2043_v62 = vpop.f32.mrb[19].mxu0  ;;  %2053 = vmatmul.mubr.msk.f32.vlgmr.msra.gmra.mrb[14].mxu1 %vm860_vm4, %v1346_v61 }
 0x7f0   : > { %2170 = vmatpush3.bf16.msra.mxu1 %v2154_v57  ;;  %2063 = vmatprep.mubr.msk.f32.mxu1 %vm860_vm4, %v1264_v0 }
 0x7f1   : > { %2172 = vmatprep.subr.bf16.mxu1 %v2158_v1 }
 0x7f4   : > { %2174 = vmatpush3.bf16.msra.mxu1 %v2158_v1 }
 0x7f5   : > { %2188 = vmatprep.subr.bf16.mxu1 %v2154_v57 }
 0x7f7   : > { %2064 = vmatmul.mubr.msk.f32.vlgmr.msra.gmra.mrb[16].mxu1 %vm860_vm4, %v1265_v6 }
 0x7f8   : > { %2190 = vmatpush3.bf16.msra.mxu1 %v2154_v57 }
 0x7f9   : > { %2192 = vmatprep.subr.bf16.mxu1 %v2158_v1 }
 0x7fc   : > { %2194 = vmatpush3.bf16.msra.mxu1 %v2158_v1 }
 0x8c2   : > { %v1419_v5 = vpop.f32.mrb[14].mxu1 }
 0x8c3   : > { %v1420_v63 = vadd.f32 1.0, %v1419_v5  ;;  %v2054_v2 = vpop.f32.mrb[15].mxu1 }
 0x8c5   : > { %vm1423_vm6 = vcmp.eq.f32.partialorder %v1420_v63, 0.0 }
 0x8c6   : > { %v1424_v3 = vsel %vm1423_vm6, 1.0, %v1420_v63 }
 0x8c7   : > { %2247 = vrsqrt.f32 %v1424_v3 }
 0x8ca   : > { %v2065_v4 = vpop.f32.mrb[16].mxu1 }
 0x8cb   : > { %v1508_v7 = vpop.f32.mrb[17].mxu1  ;;  %v1514_v11 = vadd.f32 %v2065_v4, %v1434_v10 }
 0x8cc   : > { %v1509_v13 = vadd.f32 %v1508_v7, %v1429_v9 }
 0x8d1   : > { %v2248_v8 = vpop.eup %2247 }
 0x8d2   : > { %v1520_v12 = vrot.slane %v2248_v8, %v2487_v35 }
 0x8d4   : > { %v1522_v14 = vmul.f32 %v1520_v12, %v1514_v11  ;;  %v1521_v15 = vmul.f32 %v1520_v12, %v1509_v13 }
 0x8d6   : > { %2074 = vmatprep.mubr.msk.f32.mxu0 %vm287_vm1, %v1521_v15 }
 0x8d7   : > { %2075 = vmatmul.mubr.msk.f32.vlgmr.msra.gmra.mrb[20].mxu0 %vm287_vm1, %v1522_v14 }
 0x9aa   : > { %v2076_v16 = vpop.f32.mrb[20].mxu0 }
 0x9ab   : > { %v1595_v17 = vpop.f32.mrb[21].mxu0 }
 0x9ac   : > { %2085 = vmatprep.mubr.msk.f32.mxu1 %vm860_vm4, %v1595_v17 }
 0x9ad   : > { %2086 = vmatmul.mubr.msk.f32.vlgmr.msra.gmra.mrb[18].mxu1 %vm860_vm4, %v2076_v16 }
 0xa80   : > { %v2087_v18 = vpop.f32.mrb[18].mxu1 }
 0xa81   : > { %v1682_v19 = vadd.f32 %v2087_v18, %v1522_v14  ;;  %v1676_v20 = vpop.f32.mrb[19].mxu1 }
 0xa82   : > { %v1677_v35 = vadd.f32 %v1676_v20, %v1521_v15 }
 0xa83   : > { %v1686_v21 = vmul.f32 %v1682_v19, %v1520_v12 }
 0xa84   : > { %v1685_v22 = vmul.f32 %v1677_v35, %v1520_v12 }
 0xa85   : > { %v1688_v23 = vmax.f32 %v1686_v21, 0.0 }
 0xa86   : > { %v1687_v24 = vmax.f32 %v1685_v22, 0.0 }
 0xa87   : > { %1690 = vst.msk [vmem:[%s271_s19 + $0x8] sm:$0xff] %vm287_vm1, %v1688_v23 }
 0xa88   : > { %1689 = vst.msk [vmem:[%s271_s19] sm:$0xff] %vm287_vm1, %v1687_v24 }
 0xa89   : > { %2262 = shalt.err (!%p2259_p3)
}
 0xa8a   : > { %s2263_s14 = scalar_lea.hbm %s2585_s23, 256  ;;  %s2267_s17 = scalar_lea.hbm %s2639_s7, 512 }
 0xa8b   : > { %p2264_p4 = scmp.ne.s32.totalorder %s2585_s23, %s2263_s14  ;;  %p2268_p9 = scmp.lt.u32.totalorder %s2585_s23, %s2639_s7 }
 0xa8c   : > { %p2269_p10 = scmp.lt.u32.totalorder %s2267_s17, %s2263_s14  ;;  %p2271_p12 = scmp.lt.u32.totalorder %s2263_s14, %s2585_s23 }
 0xa8d   : > { %p2265_p7 = pnand %p2264_p4, %p2399_p5 }
 0xa8e   : > { %p2270_p11 = por %p2269_p10, %p2268_p9 }
 0xa8f   : > { %p2266_p8 = pneg %p2265_p7 }
 0xa90   : > { %p2272_p13 = por %p2271_p12, %p2270_p11 }
 0xa92   : > { %p2273_p0 = pnand %p2272_p13, %p2266_p8 }
 0xa94   : > { %2276 = shalt.err (!%p2273_p0)
}
 0xa95   : > { %s2319_s21 = smov 128   ;;  %s2320_s22 = smov 8  }
 0xa96   : > { %2195 = dma.vmem_to_hbm [thread:$0]  (%p2399_p5), %s2587_s20, 256, %s2585_s23, %s2591_s28, %s2319_s21, %s2319_s21, %s2320_s22  }
 0xa97 PF: > { %p2201_p1 = scmp.ge.s32.totalorder %s2311_s27, 2  ;;  %s1720_s29 = sand.u32 1, %s2299_s24  }
 0xa98   : > { %s1721_s8 = scalar_lea.sflag [#allocation3], %s1720_s29 }
 0xa99   : > { %p2198_p2 = pnand %p2201_p1, %p2403_p6 }
 0xa9b   : > { %2294 = dma.done.wait (!%p2198_p2), %s1721_s8, 256  }
 0xa9c   : > { %2296 = vsyncadd (!%p2198_p2), %s1721_s8, 4294967040  ;;  %p17_p3 = scmp.ge.s32.totalorder %s2386_s30, 4   ;;  %s2644_s24 = smov %s2303_s25 }
 0xa9d   : > { %s2645_s25 = smov %s2307_s26  ;;  %s2646_s26 = smov %s2397_s10 }
 0xa9e   : > { %s2647_s27 = smov %s2386_s30  ;;  %19 = sbr.rel (!%p17_p3) target bundleno = 3 (0x3), region = 83 }
 0xaa5   :  { %1726 = vsyncpa [#allocation3], 1 }
 0xaa6   :  { %1728 = vsyncpa [#allocation3 + $0x1], 1 }

</bundles_post_ra>
